<compile_context>
chip_gen: v7x
topology: tpu7x:2x2x1
jax: 0.10.0
libtpu: 0.0.40
codegen_flags: <defaults>
</compile_context>

<pallas_src>
import functools

import jax
import jax.numpy as jnp
from jax import lax
from jax.experimental import pallas as pl
from jax.experimental.pallas import tpu as pltpu


# --------------------------------------------------------------------------- #
# Helpers
# --------------------------------------------------------------------------- #
def _round_up(x, m):
    return (x + m - 1) // m * m


def _vmem_capacity_bytes():
    try:
        return int(pltpu.get_tpu_info().vmem_capacity_bytes)
    except Exception:
        return 64 << 20  # conservative (v7x per-TC VMEM); safe on every generation


def _pick_row_tile(n_pad, din_p, hd_p, vmem_cap):
    """Largest row tile whose *total* resident VMEM (adj/embs double buffers,
    resident weights, f32 accumulator, bf16 t, outputs, intermediates) fits a
    conservative fraction of the physical VMEM."""
    budget = int(0.70 * vmem_cap)

    def est(t):
        pass1 = (2 * t * n_pad * 2          # adj row tile, bf16, double-buffered
                 + 2 * t * din_p * 2        # embs row tile, bf16, double-buffered
                 + din_p * hd_p * 2         # W^T resident (bf16)
                 + hd_p * 4                 # bias
                 + n_pad * hd_p * 4         # f32 accumulator scratch
                 + n_pad * hd_p * 2         # bf16 t output (resident)
                 + n_pad * 4                # De scratch
                 + 2 * t * 4                # Dv^-1/2 output tile
                 + 4 * t * hd_p * 4)        # per-tile intermediates headroom
        pass2 = (2 * t * n_pad * 2          # adj row tile
                 + 2 * n_pad * hd_p * 2     # resident bf16 t (counted double)
                 + 2 * t * 4                # Dv^-1/2 tile
                 + 2 * t * hd_p * 4         # output tile, double-buffered
                 + 3 * t * hd_p * 4)        # intermediates headroom
        return max(pass1, pass2)

    for t in (1024, 512, 256, 128):
        if t <= n_pad and n_pad % t == 0 and est(t) <= budget:
            return t, est(t)
    # TODO(synk): if even a 128-row tile misses the budget (huge N * hyper_dim), the
    # resident t itself no longer fits VMEM and an extra tiling level over t's
    # rows / hd columns would be needed.
    return 128, est(128)


# --------------------------------------------------------------------------- #
# Fused single-call kernel (adj fully resident in VMEM)
# --------------------------------------------------------------------------- #
def _fused_kernel(adj_ref, embs_ref, w_ref, b_ref, out_ref, *, leaky):
    adj = adj_ref[...]                                          # (Np, Np) bf16
    np_ = adj.shape[0]
    ones_col = jnp.ones((np_, 1), dtype=jnp.bfloat16)

    # Degrees with f32 MXU accumulation; the +1 folds the identity of H = adj + I.
    d_v = jnp.dot(adj, ones_col, preferred_element_type=jnp.float32) + 1.0
    dv_is = lax.rsqrt(d_v)                                      # (Np, 1)
    d_e = lax.dot_general(adj, ones_col, (((0,), (0,)), ((), ())),
                          preferred_element_type=jnp.float32) + 1.0   # (Np, 1)

    # Linear layer + Dv^-1/2 scaling.
    xw = jnp.dot(embs_ref[...], w_ref[...],
                 preferred_element_type=jnp.float32) + b_ref[...]
    z0 = dv_is * xw                                             # (Np, Hp) f32

    # t = De^-1 * (H^T @ z0);  H^T z = adj^T z + z  (contract adj dim 0, no transpose).
    t = (lax.dot_general(adj, z0.astype(jnp.bfloat16),
                         (((0,), (0,)), ((), ())),
                         preferred_element_type=jnp.float32) + z0) / d_e

    # y = Dv^-1/2 * (H @ t) = Dv^-1/2 * (adj @ t + t)
    y = dv_is * (jnp.dot(adj, t.astype(jnp.bfloat16),
                         preferred_element_type=jnp.float32) + t)
    out_ref[...] = jnp.where(y >= 0, y, leaky * y).astype(out_ref.dtype)


# --------------------------------------------------------------------------- #
# Two-pass path, pass 1:
#   accumulate t = De^-1 * (H^T @ z0) (f32 scratch, bf16 output) and Dv^-1/2.
# --------------------------------------------------------------------------- #
def _build_t_kernel(adj_ref, embs_ref, w_ref, b_ref, t_ref, dvis_ref,
                    acc_ref, de_ref):
    i = pl.program_id(0)
    nt = pl.num_programs(0)
    tile_n, n_pad = adj_ref.shape

    @pl.when(i == 0)
    def _init():
        acc_ref[...] = jnp.zeros_like(acc_ref)
        de_ref[...] = jnp.zeros_like(de_ref)

    adj = adj_ref[...]                                          # (tile, Np) bf16
    ones_np = jnp.ones((n_pad, 1), dtype=jnp.bfloat16)
    ones_tile = jnp.ones((tile_n, 1), dtype=jnp.bfloat16)

    # Vertex degrees of this row tile (f32 MXU accumulation; +1 = identity of H).
    dv_is = lax.rsqrt(jnp.dot(adj, ones_np,
                              preferred_element_type=jnp.float32) + 1.0)
    dvis_ref[...] = dv_is                                       # (tile, 1) f32

    # Hyperedge-degree partial sums: column sums of this tile, directly as a column.
    de_ref[...] += lax.dot_general(adj, ones_tile, (((0,), (0,)), ((), ())),
                                   preferred_element_type=jnp.float32)

    # Linear layer (W^T / embs already bf16) + Dv^-1/2 scaling.
    xw = jnp.dot(embs_ref[...], w_ref[...],
                 preferred_element_type=jnp.float32) + b_ref[...]
    z0 = dv_is * xw                                             # (tile, Hp) f32

    # H^T @ z0:  adj_tile^T @ z0 (contract adj dim 0) + identity part on this tile's rows.
    acc_ref[...] += lax.dot_general(adj, z0.astype(jnp.bfloat16),
                                    (((0,), (0,)), ((), ())),
                                    preferred_element_type=jnp.float32)
    r0 = pl.multiple_of(i * tile_n, tile_n)
    acc_ref[pl.ds(r0, tile_n), :] += z0

    # Finalize: hyperedge normalisation, emit bf16 t for pass 2.
    @pl.when(i == nt - 1)
    def _finalize():
        t_ref[...] = (acc_ref[...] / (de_ref[...] + 1.0)).astype(t_ref.dtype)


# --------------------------------------------------------------------------- #
# Two-pass path, pass 2:  out_tile = LeakyReLU( Dv^-1/2 * (adj_tile @ t + t[rows]) )
# --------------------------------------------------------------------------- #
def _propagate_kernel(adj_ref, t_ref, dvis_ref, out_ref, *, leaky):
    i = pl.program_id(0)
    tile_n = adj_ref.shape[0]
    r0 = pl.multiple_of(i * tile_n, tile_n)

    t_rows = t_ref[pl.ds(r0, tile_n), :].astype(jnp.float32)    # identity part of H
    y = jnp.dot(adj_ref[...], t_ref[...],
                preferred_element_type=jnp.float32) + t_rows
    y = dvis_ref[...] * y
    out_ref[...] = jnp.where(y >= 0, y, leaky * y).astype(out_ref.dtype)


# --------------------------------------------------------------------------- #
# Wrapper
# --------------------------------------------------------------------------- #
@functools.partial(jax.jit, static_argnames=("leaky", "act", "force_path"))
def hgcn_conv(adj, embs, w, b, *, leaky=0.2, act=True, force_path="auto"):
    """adj: (N,N), embs: (N,Din), w: (Hd,Din) torch nn.Linear layout, b: (Hd,)."""
    n = adj.shape[0]
    din = embs.shape[1]
    hd = w.shape[0]

    n_pad = _round_up(n, 128)
    din_p = _round_up(din, 128)
    hd_p = _round_up(hd, 128)

    f32, bf16 = jnp.float32, jnp.bfloat16

    # Pad directly in bf16 (half the pad-copy HBM bytes); skip copies that are no-ops.
    # NOTE: padded rows/cols of adj MUST be exactly zero — padded rows of t pick up
    # the bias but never feed valid outputs precisely because those columns are zero.
    def _pad2(x, rows, cols, dtype):
        xr, xc = x.shape
        if (xr, xc) == (rows, cols) and x.dtype == dtype:
            return x
        return jnp.zeros((rows, cols), dtype).at[:xr, :xc].set(x.astype(dtype))

    adj_b = _pad2(adj, n_pad, n_pad, bf16)
    embs_b = _pad2(embs, n_pad, din_p, bf16)
    w_t_b = _pad2(w.T, din_p, hd_p, bf16)            # nn.Linear weight is (Hd, Din)
    b_p = jnp.zeros((1, hd_p), f32).at[0, :hd].set(b.astype(f32))

    leaky_eff = float(leaky) if act else 1.0
    vmem_cap = _vmem_capacity_bytes()

    # ---------------- fused single-call path (adj resident in VMEM) ----------------
    fused_bytes = (n_pad * n_pad * 2 + n_pad * din_p * 2 + din_p * hd_p * 2
                   + n_pad * hd_p * 24 + (4 << 20))
    use_fused = (force_path == "fused"
                 or (force_path == "auto" and fused_bytes <= int(0.55 * vmem_cap)))

    if use_fused:
        vmem_limit = int(min(max(fused_bytes + (8 << 20), 32 << 20),
                             vmem_cap - (8 << 20)))
        out_p = pl.pallas_call(
            functools.partial(_fused_kernel, leaky=leaky_eff),
            out_shape=jax.ShapeDtypeStruct((n_pad, hd_p), f32),
            in_specs=[pl.BlockSpec(memory_space=pltpu.MemorySpace.VMEM)] * 4,
            out_specs=pl.BlockSpec(memory_space=pltpu.MemorySpace.VMEM),
            compiler_params=pltpu.CompilerParams(vmem_limit_bytes=vmem_limit),
        )(adj_b, embs_b, w_t_b, b_p)
        return out_p[:n, :hd]

    # ---------------- two-pass row-tiled path ---------------------------------------
    tile_n, est_bytes = _pick_row_tile(n_pad, din_p, hd_p, vmem_cap)
    num_tiles = n_pad // tile_n
    vmem_limit = int(min(max(est_bytes + (8 << 20), 32 << 20),
                         vmem_cap - (8 << 20)))

    # Pass 1: t (bf16) and Dv^-1/2; De kept in a VMEM scratch, applied on last step.
    t_b, dvis = pl.pallas_call(
        _build_t_kernel,
        out_shape=(jax.ShapeDtypeStruct((n_pad, hd_p), bf16),
                   jax.ShapeDtypeStruct((n_pad, 1), f32)),
        grid_spec=pltpu.PrefetchScalarGridSpec(
            num_scalar_prefetch=0,
            grid=(num_tiles,),
            in_specs=[
                pl.BlockSpec((tile_n, n_pad), lambda i: (i, 0)),   # adj row tile (bf16)
                pl.BlockSpec((tile_n, din_p), lambda i: (i, 0)),   # embs row tile (bf16)
                pl.BlockSpec((din_p, hd_p), lambda i: (0, 0)),     # W^T resident (bf16)
                pl.BlockSpec((1, hd_p), lambda i: (0, 0)),         # bias resident (f32)
            ],
            out_specs=[
                pl.BlockSpec((n_pad, hd_p), lambda i: (0, 0)),     # t (bf16), written last step
                pl.BlockSpec((tile_n, 1), lambda i: (i, 0)),       # Dv^-1/2
            ],
            scratch_shapes=[pltpu.VMEM((n_pad, hd_p), f32),        # f32 accumulator
                            pltpu.VMEM((n_pad, 1), f32)],          # De accumulator
        ),
        compiler_params=pltpu.CompilerParams(
            dimension_semantics=("arbitrary",),
            vmem_limit_bytes=vmem_limit),
    )(adj_b, embs_b, w_t_b, b_p)

    # Pass 2: propagate + activation; t and Dv^-1/2 reused, no re-reduction.
    out_p = pl.pallas_call(
        functools.partial(_propagate_kernel, leaky=leaky_eff),
        out_shape=jax.ShapeDtypeStruct((n_pad, hd_p), f32),
        grid_spec=pltpu.PrefetchScalarGridSpec(
            num_scalar_prefetch=0,
            grid=(num_tiles,),
            in_specs=[
                pl.BlockSpec((tile_n, n_pad), lambda i: (i, 0)),   # adj row tile (bf16)
                pl.BlockSpec((n_pad, hd_p), lambda i: (0, 0)),     # t resident (bf16)
                pl.BlockSpec((tile_n, 1), lambda i: (i, 0)),       # Dv^-1/2 tile
            ],
            out_specs=pl.BlockSpec((tile_n, hd_p), lambda i: (i, 0)),
        ),
        compiler_params=pltpu.CompilerParams(
            dimension_semantics=("parallel",),
            vmem_limit_bytes=vmem_limit),
    )(adj_b, t_b, dvis)

    return out_p[:n, :hd]


# --------------------------------------------------------------------------- #
# Reference (plain jnp, f32, mirrors the PyTorch module)
# --------------------------------------------------------------------------- #
def _reference(adj, embs, w, b, leaky=0.2, act=True):
    n = adj.shape[0]
    h = adj + jnp.eye(n, dtype=adj.dtype)
    d_v = jnp.sum(h, axis=1)
    d_e = jnp.sum(h, axis=0)
    L = (jnp.diag(jnp.power(d_v, -0.5)) @ h @ jnp.eye(n, dtype=adj.dtype)
         @ jnp.diag(1.0 / d_e) @ h.T @ jnp.diag(jnp.power(d_v, -0.5)))
    y = L @ (embs @ w.T + b)
    if act:
        return jnp.where(y >= 0, y, leaky * y)
    return y


if __name__ == "__main__":
    key = jax.random.PRNGKey(0)
    k_adj, k_emb, k_w, k_b = jax.random.split(key, 4)

    N = 16          # number of vertices (== number of hyperedges here)
    INPUT_DIM = 8
    HYPER_DIM = 32
    LEAKY = 0.2
    # TODO(synk): dropout is a no-op here (inference); add pltpu PRNG masking if
    # training-mode dropout is ever needed.

    adj = jax.random.uniform(k_adj, (N, N), dtype=jnp.float32)
    embs = jax.random.normal(k_emb, (N, INPUT_DIM), dtype=jnp.float32)
    # nn.Linear(input_dim, hyper_dim): weight (hyper_dim, input_dim), bias (hyper_dim,)
    w = jax.random.normal(k_w, (HYPER_DIM, INPUT_DIM), dtype=jnp.float32) * 0.1
    b = jax.random.normal(k_b, (HYPER_DIM,), dtype=jnp.float32) * 0.1

    ref = _reference(adj, embs, w, b, leaky=LEAKY, act=True)

    # Exercise both code paths (fused VMEM-resident and two-pass row-tiled).
    out_fused = jax.block_until_ready(
        hgcn_conv(adj, embs, w, b, leaky=LEAKY, act=True, force_path="fused"))
    out_tiled = jax.block_until_ready(
        hgcn_conv(adj, embs, w, b, leaky=LEAKY, act=True, force_path="two_pass"))

    assert out_fused.shape == (N, HYPER_DIM)
    assert out_tiled.shape == (N, HYPER_DIM)
    # bf16 MXU operands / bf16 adj storage with f32 accumulation -> loose tolerance.
    err_f = float(jnp.max(jnp.abs(out_fused - ref)))
    err_t = float(jnp.max(jnp.abs(out_tiled - ref)))
    assert jnp.allclose(out_fused, ref, atol=2e-2, rtol=2e-2), (
        f"fused path mismatch vs reference (max abs err {err_f})")
    assert jnp.allclose(out_tiled, ref, atol=2e-2, rtol=2e-2), (
        f"two-pass path mismatch vs reference (max abs err {err_t})")
    print("KERNEL_OK")
</pallas_src>

<mosaic_0001>
module attributes {stable_mosaic.version = 11 : i64} {
  func.func @_fused_kernel(%arg0: memref<128x128xbf16, #tpu.memory_space<vmem>>, %arg1: memref<128x128xbf16, #tpu.memory_space<vmem>>, %arg2: memref<128x128xbf16, #tpu.memory_space<vmem>>, %arg3: memref<1x128xf32, #tpu.memory_space<vmem>>, %arg4: memref<128x128xf32, #tpu.memory_space<vmem>>) attributes {dimension_semantics = [], scalar_prefetch = 0 : i64, scratch_operands = 0 : i64, tpu.core_type = #tpu.core_type<tc>} {
    %c0 = arith.constant 0 : index
    %c0_0 = arith.constant 0 : index
    %0 = vector.load %arg0[%c0, %c0_0] : memref<128x128xbf16, #tpu.memory_space<vmem>>, vector<128x128xbf16>
    %cst = arith.constant 1.000000e+00 : bf16
    %1 = vector.broadcast %cst : bf16 to vector<128x1xbf16>
    %cst_1 = arith.constant dense<0.000000e+00> : vector<128x1xf32>
    %2 = tpu.matmul %0, %1, %cst_1 {dimension_numbers = #tpu.dot_dimension_numbers<[1], [0], [0], [1], [0, 0, 1, 1], [], []>} : vector<128x128xbf16>, vector<128x1xbf16>, vector<128x1xf32> -> vector<128x1xf32>
    %cst_2 = arith.constant 1.000000e+00 : f32
    %3 = vector.broadcast %cst_2 : f32 to vector<128x1xf32>
    %4 = arith.addf %2, %3 : vector<128x1xf32>
    %5 = math.rsqrt %4 : vector<128x1xf32>
    %cst_3 = arith.constant dense<0.000000e+00> : vector<128x1xf32>
    %6 = tpu.matmul %0, %1, %cst_3 {dimension_numbers = #tpu.dot_dimension_numbers<[0], [0], [1], [1], [0, 1, 1, 1], [], []>} : vector<128x128xbf16>, vector<128x1xbf16>, vector<128x1xf32> -> vector<128x1xf32>
    %cst_4 = arith.constant 1.000000e+00 : f32
    %7 = vector.broadcast %cst_4 : f32 to vector<128x1xf32>
    %8 = arith.addf %6, %7 : vector<128x1xf32>
    %c0_5 = arith.constant 0 : index
    %c0_6 = arith.constant 0 : index
    %9 = vector.load %arg1[%c0_5, %c0_6] : memref<128x128xbf16, #tpu.memory_space<vmem>>, vector<128x128xbf16>
    %c0_7 = arith.constant 0 : index
    %c0_8 = arith.constant 0 : index
    %10 = vector.load %arg2[%c0_7, %c0_8] : memref<128x128xbf16, #tpu.memory_space<vmem>>, vector<128x128xbf16>
    %cst_9 = arith.constant dense<0.000000e+00> : vector<128x128xf32>
    %11 = tpu.matmul %9, %10, %cst_9 {dimension_numbers = #tpu.dot_dimension_numbers<[1], [0], [0], [1], [0, 0, 1, 1], [], []>} : vector<128x128xbf16>, vector<128x128xbf16>, vector<128x128xf32> -> vector<128x128xf32>
    %c0_10 = arith.constant 0 : index
    %c0_11 = arith.constant 0 : index
    %12 = vector.load %arg3[%c0_10, %c0_11] : memref<1x128xf32, #tpu.memory_space<vmem>>, vector<1x128xf32>
    %13 = vector.broadcast %12 : vector<1x128xf32> to vector<128x128xf32>
    %14 = arith.addf %11, %13 : vector<128x128xf32>
    %15 = vector.broadcast %5 : vector<128x1xf32> to vector<128x128xf32>
    %16 = arith.mulf %15, %14 : vector<128x128xf32>
    %17 = arith.truncf %16 : vector<128x128xf32> to vector<128x128xbf16>
    %cst_12 = arith.constant dense<0.000000e+00> : vector<128x128xf32>
    %18 = tpu.matmul %0, %17, %cst_12 {dimension_numbers = #tpu.dot_dimension_numbers<[0], [0], [1], [1], [0, 1, 1, 1], [], []>} : vector<128x128xbf16>, vector<128x128xbf16>, vector<128x128xf32> -> vector<128x128xf32>
    %19 = arith.addf %18, %16 : vector<128x128xf32>
    %20 = vector.broadcast %8 : vector<128x1xf32> to vector<128x128xf32>
    %21 = arith.divf %19, %20 : vector<128x128xf32>
    %22 = arith.truncf %21 : vector<128x128xf32> to vector<128x128xbf16>
    %cst_13 = arith.constant dense<0.000000e+00> : vector<128x128xf32>
    %23 = tpu.matmul %0, %22, %cst_13 {dimension_numbers = #tpu.dot_dimension_numbers<[1], [0], [0], [1], [0, 0, 1, 1], [], []>} : vector<128x128xbf16>, vector<128x128xbf16>, vector<128x128xf32> -> vector<128x128xf32>
    %24 = arith.addf %23, %21 : vector<128x128xf32>
    %25 = vector.broadcast %5 : vector<128x1xf32> to vector<128x128xf32>
    %26 = arith.mulf %25, %24 : vector<128x128xf32>
    %cst_14 = arith.constant 0.000000e+00 : f32
    %27 = vector.broadcast %cst_14 : f32 to vector<128x128xf32>
    %28 = arith.cmpf oge, %26, %27 : vector<128x128xf32>
    %cst_15 = arith.constant 2.000000e-01 : f32
    %29 = vector.broadcast %cst_15 : f32 to vector<128x128xf32>
    %30 = arith.mulf %29, %26 : vector<128x128xf32>
    %31 = arith.select %28, %26, %30 : vector<128x128xi1>, vector<128x128xf32>
    %c0_16 = arith.constant 0 : index
    %c0_17 = arith.constant 0 : index
    %32 = vector.load %arg4[%c0_16, %c0_17] : memref<128x128xf32, #tpu.memory_space<vmem>>, vector<128x128xf32>
    tpu.vector_store %arg4[%c0_16, %c0_17], %31 {strides = array<i32>} : memref<128x128xf32, #tpu.memory_space<vmem>>, vector<128x128xf32>,
    return
  }
}

</mosaic_0001>

<bundles_post_ra>
// kernel: hgcn_conv.1
= control target key start
LH: loop header
LB: loop body
LE: loop exit
PB: predicated region body
PF: predicated region fallthrough
CT: control target
= control target key end

     0   :  { %v1417_v0 = vmov 1065369472   ;;  %v1418_v30 = vmov 0   ;;  %s1861_s0 = inlined_call_operand.vmem [shape: bf16[128,128], index: 0, kind: input, shape index: {}]   ;;  %s1862_s2 = inlined_call_operand.vmem [shape: bf16[128,128], index: 2, kind: input, shape index: {}]   ;;  %s1863_s1 = inlined_call_operand.vmem [shape: bf16[128,128], index: 1, kind: input, shape index: {}]   ;;  %s1864_s3 = inlined_call_operand.vmem [shape: f32[1,128], index: 3, kind: input, shape index: {}]   ;;  %s1865_s4 = inlined_call_operand.vmem [shape: f32[128,128], index: 4, kind: output, shape index: {}]  }
   0x1   :  { %1148 = vmatprep.subr.bf16.mxu0 %v1417_v0  ;;  %v1447_v1 = vld [vmem:[%s1861_s0] sm:$0xff]   ;;  %1180 = vmatprep.subr.bf16.mxu1 %v1417_v0  ;;  %v1329_v2 = vld [vmem:[%s1861_s0 + $0x8] sm:$0xff]   ;;  %v1457_v3 = vld [vmem:[%s1861_s0 + $0x10] sm:$0xff]  }
   0x2   :  { %1149 = vmatpush3.bf16.msra.mxu0 %v1417_v0  ;;  %1181 = vmatpush3.bf16.msra.mxu1 %v1417_v0  ;;  %v1463_v4 = vld [vmem:[%s1861_s0 + $0x18] sm:$0xff]   ;;  %v1469_v5 = vld [vmem:[%s1861_s0 + $0x20] sm:$0xff]   ;;  %v1475_v6 = vld [vmem:[%s1861_s0 + $0x28] sm:$0xff]  }
   0x3   :  { %196 = vxpose.xlu0.c.b16.start [1/8] %v1447_v1, 128  ;;  %1150 = vmatprep.subr.bf16.mxu0 %v1417_v0  ;;  %v1481_v7 = vld [vmem:[%s1861_s0 + $0x30] sm:$0xff]   ;;  %v1487_v8 = vld [vmem:[%s1861_s0 + $0x38] sm:$0xff]   ;;  %v1336_v9 = vld [vmem:[%s1862_s2] sm:$0xff]  }
   0x4   :  { %1164 = vmatprep.mubr.bf16.mxu0 %v1447_v1  ;;  %1182 = vmatprep.subr.bf16.mxu1 %v1417_v0  ;;  %v1337_v10 = vld [vmem:[%s1862_s2 + $0x8] sm:$0xff]   ;;  %v1338_v11 = vld [vmem:[%s1862_s2 + $0x10] sm:$0xff]   ;;  %v1339_v12 = vld [vmem:[%s1862_s2 + $0x18] sm:$0xff]  }
   0x5   :  { %v1340_v13 = vld [vmem:[%s1862_s2 + $0x20] sm:$0xff]   ;;  %v1341_v14 = vld [vmem:[%s1862_s2 + $0x28] sm:$0xff]   ;;  %v1342_v15 = vld [vmem:[%s1862_s2 + $0x30] sm:$0xff]   ;;  %1326 = vset.pattern.permute.xlu1 %v1418_v30 }
   0x6   :  { %1151 = vmatpush3.bf16.msra.mxu0 %v1417_v0  ;;  %1183 = vmatpush3.bf16.msra.mxu1 %v1417_v0  ;;  %v1344_v16 = vld [vmem:[%s1863_s1] sm:$0xff]   ;;  %v1343_v17 = vld [vmem:[%s1862_s2 + $0x38] sm:$0xff]   ;;  %v1345_v18 = vld [vmem:[%s1863_s1 + $0x8] sm:$0xff]  }
   0x7   :  { %197 = vxpose.xlu0.c.b16.cont [2/8] %v1329_v2, 128  ;;  %1152 = vmatprep.subr.bf16.mxu0 %v1417_v0  ;;  %v1346_v19 = vld [vmem:[%s1863_s1 + $0x10] sm:$0xff]   ;;  %v1347_v20 = vld [vmem:[%s1863_s1 + $0x18] sm:$0xff]   ;;  %v1348_v21 = vld [vmem:[%s1863_s1 + $0x20] sm:$0xff]  }
   0x8   :  { %1184 = vmatprep.subr.bf16.mxu1 %v1417_v0  ;;  %v1349_v22 = vld [vmem:[%s1863_s1 + $0x28] sm:$0xff]   ;;  %v1350_v23 = vld [vmem:[%s1863_s1 + $0x30] sm:$0xff]   ;;  %v1351_v24 = vld [vmem:[%s1863_s1 + $0x38] sm:$0xff]  }
   0xa   :  { %1153 = vmatpush3.bf16.msra.mxu0 %v1417_v0  ;;  %1185 = vmatpush3.bf16.msra.mxu1 %v1417_v0 }
   0xb   :  { %198 = vxpose.xlu0.c.b16.cont [3/8] %v1457_v3, 128  ;;  %1154 = vmatprep.subr.bf16.mxu0 %v1417_v0 }
   0xc   :  { %1186 = vmatprep.subr.bf16.mxu1 %v1417_v0 }
   0xe   :  { %1155 = vmatpush3.bf16.msra.mxu0 %v1417_v0  ;;  %1187 = vmatpush3.bf16.msra.mxu1 %v1417_v0 }
   0xf   :  { %199 = vxpose.xlu0.c.b16.cont [4/8] %v1463_v4, 128  ;;  %1156 = vmatprep.subr.bf16.mxu0 %v1417_v0 }
  0x10   :  { %1188 = vmatprep.subr.bf16.mxu1 %v1417_v0 }
  0x12   :  { %1157 = vmatpush3.bf16.msra.mxu0 %v1417_v0  ;;  %1189 = vmatpush3.bf16.msra.mxu1 %v1417_v0 }
  0x13   :  { %200 = vxpose.xlu0.c.b16.cont [5/8] %v1469_v5, 128  ;;  %1158 = vmatprep.subr.bf16.mxu0 %v1417_v0 }
  0x14   :  { %1190 = vmatprep.subr.bf16.mxu1 %v1417_v0 }
  0x16   :  { %1159 = vmatpush3.bf16.msra.mxu0 %v1417_v0  ;;  %1191 = vmatpush3.bf16.msra.mxu1 %v1417_v0 }
  0x17   :  { %201 = vxpose.xlu0.c.b16.cont [6/8] %v1475_v6, 128  ;;  %1160 = vmatprep.subr.bf16.mxu0 %v1417_v0 }
  0x18   :  { %1192 = vmatprep.subr.bf16.mxu1 %v1417_v0 }
  0x1a   :  { %1161 = vmatpush3.bf16.msra.mxu0 %v1417_v0  ;;  %1193 = vmatpush3.bf16.msra.mxu1 %v1417_v0 }
  0x1b   :  { %202 = vxpose.xlu0.c.b16.cont [7/8] %v1481_v7, 128  ;;  %1162 = vmatprep.subr.bf16.mxu0 %v1417_v0 }
  0x1c   :  { %1194 = vmatprep.subr.bf16.mxu1 %v1417_v0 }
  0x1e   :  { %1163 = vmatpush3.bf16.msra.mxu0 %v1417_v0  ;;  %1195 = vmatpush3.bf16.msra.mxu1 %v1417_v0 }
  0x1f   :  { %203 = vxpose.xlu0.c.b16.end [8/8] %v1487_v8, 128  ;;  %1212 = vmatprep.subr.bf16.mxu0 %v1336_v9 }
  0x21   :  { %1165 = vmatmul.mubr.bf16.vlgmr.msra.gmra.mrb[0].mxu0 %v1329_v2 }
  0x22   :  { %1168 = vmatprep.mubr.bf16.mxu0 %v1457_v3  ;;  %1213 = vmatpush3.bf16.msra.mxu0 %v1336_v9 }
  0x23   :  { %1214 = vmatprep.subr.bf16.mxu0 %v1337_v10 }
  0x26   :  { %1215 = vmatpush3.bf16.msra.mxu0 %v1337_v10 }
  0x27   :  { %1216 = vmatprep.subr.bf16.mxu0 %v1338_v11 }
  0x28   :  { %1327 = vset.pattern.permute.xlu0 %v1418_v30 }
  0x29   :  { %1169 = vmatmul.mubr.bf16.gmra.mrb[4].mxu0 %v1463_v4 }
  0x2a   :  { %1172 = vmatprep.mubr.bf16.mxu0 %v1469_v5  ;;  %1217 = vmatpush3.bf16.msra.mxu0 %v1338_v11 }
  0x2b   :  { %1218 = vmatprep.subr.bf16.mxu0 %v1339_v12 }
  0x2e   :  { %1219 = vmatpush3.bf16.msra.mxu0 %v1339_v12 }
  0x2f   :  { %1220 = vmatprep.subr.bf16.mxu0 %v1340_v13 }
  0x31   :  { %1173 = vmatmul.mubr.bf16.gmra.mrb[8].mxu0 %v1475_v6 }
  0x32   :  { %1176 = vmatprep.mubr.bf16.mxu0 %v1481_v7  ;;  %1221 = vmatpush3.bf16.msra.mxu0 %v1340_v13 }
  0x33   :  { %1222 = vmatprep.subr.bf16.mxu0 %v1341_v14 }
  0x36   :  { %1223 = vmatpush3.bf16.msra.mxu0 %v1341_v14 }
  0x37   :  { %1224 = vmatprep.subr.bf16.mxu0 %v1342_v15 }
  0x39   :  { %1177 = vmatmul.mubr.bf16.gmra.mrb[12].mxu0 %v1487_v8 }
  0x3a   :  { %1225 = vmatpush3.bf16.msra.mxu0 %v1342_v15  ;;  %1228 = vmatprep.mubr.bf16.mxu0 %v1344_v16 }
  0x3b   :  { %1226 = vmatprep.subr.bf16.mxu0 %v1343_v17 }
  0x3e   :  { %1227 = vmatpush3.bf16.msra.mxu0 %v1343_v17 }
  0x41   :  { %1229 = vmatmul.mubr.bf16.vlgmr.msra.gmra.mrb[16].mxu0 %v1345_v18 }
  0x42   :  { %1232 = vmatprep.mubr.bf16.mxu0 %v1346_v19 }
  0x49   :  { %1233 = vmatmul.mubr.bf16.gmra.mrb[20].mxu0 %v1347_v20 }
  0x4a   :  { %1236 = vmatprep.mubr.bf16.mxu0 %v1348_v21 }
  0x51   :  { %1237 = vmatmul.mubr.bf16.gmra.mrb[24].mxu0 %v1349_v22 }
  0x52   :  { %1240 = vmatprep.mubr.bf16.mxu0 %v1350_v23 }
  0x59   :  { %1241 = vmatmul.mubr.bf16.gmra.mrb[28].mxu0 %v1351_v24 }
  0x5a   :  { %1292 = vmatprep.mubr.bf16.mxu0 %v1447_v1 }
  0x69   :  { %v204_v25 = vpop.trf.xlu0 }
  0x6a   :  { %1196 = vmatprep.mubr.bf16.mxu1 %v204_v25 }
  0x6d   :  { %v1545_v26 = vpop.trf.xlu0 }
  0x6e   :  { %1197 = vmatmul.mubr.bf16.vlgmr.msra.gmra.mrb[0].mxu1 %v1545_v26 }
  0x71   :  { %v1548_v27 = vpop.trf.xlu0 }
  0x72   :  { %1200 = vmatprep.mubr.bf16.mxu1 %v1548_v27 }
  0x75   :  { %v1551_v28 = vpop.trf.xlu0 }
  0x76   :  { %1201 = vmatmul.mubr.bf16.gmra.mrb[4].mxu1 %v1551_v28 }
  0x79   :  { %v1554_v29 = vpop.trf.xlu0 }
  0x7a   :  { %1204 = vmatprep.mubr.bf16.mxu1 %v1554_v29 }
  0x7d   :  { %v1557_v31 = vpop.trf.xlu0 }
  0x7e   :  { %1205 = vmatmul.mubr.bf16.gmra.mrb[8].mxu1 %v1557_v31 }
  0x81   :  { %v1560_v32 = vpop.trf.xlu0 }
  0x82   :  { %1208 = vmatprep.mubr.bf16.mxu1 %v1560_v32 }
  0x85   :  { %v1563_v33 = vpop.trf.xlu0 }
  0x86   :  { %1209 = vmatmul.mubr.bf16.gmra.mrb[12].mxu1 %v1563_v33 }
  0x87   :  { %1260 = vmatprep.mubr.bf16.mxu1 %v204_v25 }
  0xf4   :  { %v1166_v34 = vpop.f32.mrb[0].mxu0 }
  0xf5   :  { %v126_v35 = vadd.f32 1.0, %v1166_v34  ;;  %v117_v36 = vpop.f32.mrb[1].mxu0 }
  0xf6   :  { %v1167_v37 = vpop.f32.mrb[2].mxu0  ;;  %v118_v38 = vadd.f32 1.0, %v117_v36 }
  0xf7   :  { %1352 = vrsqrt.f32 %v126_v35  ;;  %v120_v39 = vpop.f32.mrb[3].mxu0  ;;  %v129_v40 = vadd.f32 1.0, %v1167_v37 }
  0xf8   :  { %1354 = vrsqrt.f32 %v118_v38  ;;  %v121_v44 = vadd.f32 1.0, %v120_v39 }
  0xf9   :  { %1356 = vrsqrt.f32 %v129_v40 }
  0xfa   :  { %1358 = vrsqrt.f32 %v121_v44 }
  0xfc   :  { %v1170_v41 = vpop.f32.mrb[4].mxu0 }
  0xfd   :  { %v133_v42 = vpop.f32.mrb[5].mxu0  ;;  %v142_v47 = vadd.f32 1.0, %v1170_v41 }
  0xfe   :  { %v1171_v43 = vpop.f32.mrb[6].mxu0  ;;  %v134_v53 = vadd.f32 1.0, %v133_v42 }
  0xff   :  { %v136_v45 = vpop.f32.mrb[7].mxu0  ;;  %1360 = vrsqrt.f32 %v142_v47  ;;  %v145_v56 = vadd.f32 1.0, %v1171_v43 }
 0x100   :  { %v137_v0 = vadd.f32 1.0, %v136_v45 }
 0x101   :  { %v1353_v46 = vpop.eup %1352 }
 0x102   :  { %553 = vperm.xlu1 %1326, %v1353_v46   ;;  %v1355_v49 = vpop.eup %1354 }
 0x103   :  { %v1357_v55 = vpop.eup %1356 }
 0x104   :  { %v1174_v48 = vpop.f32.mrb[8].mxu0  ;;  %v1359_v58 = vpop.eup %1358 }
 0x105   :  { %v149_v50 = vpop.f32.mrb[9].mxu0  ;;  %v158_v2 = vadd.f32 1.0, %v1174_v48 }
 0x106   :  { %543 = vperm.xlu1 %1326, %v1355_v49   ;;  %v150_v51 = vadd.f32 1.0, %v149_v50  ;;  %v1175_v52 = vpop.f32.mrb[10].mxu0 }
 0x107   :  { %v152_v54 = vpop.f32.mrb[11].mxu0  ;;  %v161_v18 = vadd.f32 1.0, %v1175_v52 }
 0x108   :  { %1362 = vrsqrt.f32 %v150_v51  ;;  %v153_v14 = vadd.f32 1.0, %v152_v54 }
 0x109   :  { %1364 = vrsqrt.f32 %v134_v53  ;;  %v1361_v63 = vpop.eup %1360 }
 0x10a   :  { %558 = vperm.xlu1 %1326, %v1357_v55   ;;  %1366 = vrsqrt.f32 %v145_v56 }
 0x10c   :  { %v1178_v57 = vpop.f32.mrb[12].mxu0 }
 0x10d   :  { %v165_v59 = vpop.f32.mrb[13].mxu0  ;;  %v174_v60 = vadd.f32 1.0, %v1178_v57 }
 0x10e   :  { %548 = vperm.xlu1 %1326, %v1359_v58   ;;  %v166_v61 = vadd.f32 1.0, %v165_v59  ;;  %v1179_v62 = vpop.f32.mrb[14].mxu0 }
 0x10f   :  { %v168_v1 = vpop.f32.mrb[15].mxu0  ;;  %v177_v34 = vadd.f32 1.0, %v1179_v62 }
 0x110   :  { %1368 = vrsqrt.f32 %v166_v61  ;;  %v169_v25 = vadd.f32 1.0, %v168_v1 }
 0x111   :  { %1370 = vrsqrt.f32 %v174_v60 }
 0x112   :  { %v1363_v9 = vpop.eup %1362  ;;  %573 = vperm.xlu1 %1326, %v1361_v63   ;;  %1372 = vrsqrt.f32 %v137_v0 }
 0x113   :  { %583 = vperm.xlu0 %1327, %v1363_v9   ;;  %v1365_v11 = vpop.eup %1364  ;;  %1374 = vrsqrt.f32 %v158_v2 }
 0x114   :  { %v1566_v10 = vpop.f32.mrb[16].mxu0  ;;  %v1367_v16 = vpop.eup %1366  ;;  %1376 = vrsqrt.f32 %v153_v14 }
 0x115   :  { %v1568_v12 = vpop.f32.mrb[17].mxu0  ;;  %1378 = vrsqrt.f32 %v161_v18 }
 0x116   :  { %563 = vperm.xlu1 %1326, %v1365_v11   ;;  %v1570_v13 = vpop.f32.mrb[18].mxu0  ;;  %1380 = vrsqrt.f32 %v169_v25 }
 0x117   :  { %v1572_v15 = vpop.f32.mrb[19].mxu0  ;;  %1382 = vrsqrt.f32 %v177_v34 }
 0x11a   :  { %v1369_v17 = vpop.eup %1368  ;;  %578 = vperm.xlu1 %1326, %v1367_v16  }
 0x11b   :  { %603 = vperm.xlu0 %1327, %v1369_v17   ;;  %v1371_v19 = vpop.eup %1370 }
 0x11c   :  { %v1574_v20 = vpop.f32.mrb[20].mxu0  ;;  %v1373_v21 = vpop.eup %1372 }
 0x11d   :  { %v1576_v22 = vpop.f32.mrb[21].mxu0  ;;  %v1375_v24 = vpop.eup %1374 }
 0x11e   :  { %568 = vperm.xlu1 %1326, %v1373_v21   ;;  %v1578_v23 = vpop.f32.mrb[22].mxu0  ;;  %v1377_v36 = vpop.eup %1376 }
 0x11f   :  { %613 = vperm.xlu0 %1327, %v1371_v19   ;;  %v1580_v30 = vpop.f32.mrb[23].mxu0  ;;  %v1379_v40 = vpop.eup %1378 }
 0x120   :  { %v1381_v42 = vpop.eup %1380 }
 0x121   :  { %v1383_v46 = vpop.eup %1382 }
 0x122   :  { %593 = vperm.xlu1 %1326, %v1375_v24  }
 0x124   :  { %v1582_v35 = vpop.f32.mrb[24].mxu0 }
 0x125   :  { %v1584_v37 = vpop.f32.mrb[25].mxu0 }
 0x126   :  { %588 = vperm.xlu1 %1326, %v1377_v36   ;;  %v1586_v38 = vpop.f32.mrb[26].mxu0 }
 0x127   :  { %v1588_v39 = vpop.f32.mrb[27].mxu0 }
 0x12a   :  { %598 = vperm.xlu1 %1326, %v1379_v40  }
 0x12c   :  { %v1590_v41 = vpop.f32.mrb[28].mxu0 }
 0x12d   :  { %v1592_v43 = vpop.f32.mrb[29].mxu0 }
 0x12e   :  { %608 = vperm.xlu1 %1326, %v1381_v42   ;;  %v1594_v44 = vpop.f32.mrb[30].mxu0 }
 0x12f   :  { %v1596_v45 = vpop.f32.mrb[31].mxu0 }
 0x132   :  { %618 = vperm.xlu1 %1326, %v1383_v46   ;;  %v1051_v46 = vld [vmem:[%s1864_s3] ss:$0 sm:$0xff] }
 0x141   :  { %v1198_v47 = vpop.f32.mrb[0].mxu1 }
 0x142   :  { %v246_v48 = vpop.f32.mrb[1].mxu1  ;;  %v255_v52 = vadd.f32 1.0, %v1198_v47 }
 0x143   :  { %v247_v49 = vadd.f32 1.0, %v246_v48  ;;  %v1199_v50 = vpop.f32.mrb[2].mxu1  ;;  %v479_v48 = vadd.f32 %v1051_v46, %v1568_v12 }
 0x144   :  { %v249_v51 = vpop.f32.mrb[3].mxu1  ;;  %v258_v54 = vadd.f32 1.0, %v1199_v50  ;;  %v482_v50 = vadd.f32 %v1051_v46, %v1572_v15 }
 0x145   :  { %v250_v53 = vadd.f32 1.0, %v249_v51  ;;  %744 = vperm.xlu0 %1327, %v247_v49   ;;  %v490_v49 = vadd.f32 %v1570_v13, %v1051_v46  ;;  %v487_v51 = vadd.f32 %v1566_v10, %v1051_v46 }
 0x147   :  { %749 = vperm.xlu1 %1326, %v250_v53  }
 0x149   :  { %v1202_v55 = vpop.f32.mrb[4].mxu1  ;;  %754 = vperm.xlu0 %1327, %v255_v52  }
 0x14a   :  { %v262_v56 = vpop.f32.mrb[5].mxu1  ;;  %v271_v60 = vadd.f32 1.0, %v1202_v55 }
 0x14b   :  { %v263_v57 = vadd.f32 1.0, %v262_v56  ;;  %v1203_v58 = vpop.f32.mrb[6].mxu1  ;;  %759 = vperm.xlu1 %1326, %v258_v54  }
 0x14c   :  { %v265_v59 = vpop.f32.mrb[7].mxu1  ;;  %v274_v62 = vadd.f32 1.0, %v1203_v58  ;;  %v495_v58 = vadd.f32 %v1051_v46, %v1576_v22 }
 0x14d   :  { %v266_v61 = vadd.f32 1.0, %v265_v59  ;;  %764 = vperm.xlu0 %1327, %v263_v57   ;;  %v506_v59 = vadd.f32 %v1578_v23, %v1051_v46 }
 0x14f   :  { %769 = vperm.xlu1 %1326, %v266_v61   ;;  %v498_v61 = vadd.f32 %v1051_v46, %v1580_v30  ;;  %v511_v30 = vadd.f32 %v1051_v46, %v1584_v37  ;;  %v522_v37 = vadd.f32 %v1586_v38, %v1051_v46 }
 0x151   :  { %v1206_v63 = vpop.f32.mrb[8].mxu1  ;;  %774 = vperm.xlu0 %1327, %v271_v60   ;;  %v503_v60 = vadd.f32 %v1574_v20, %v1051_v46 }
 0x152   :  { %v278_v0 = vpop.f32.mrb[9].mxu1  ;;  %v287_v11 = vadd.f32 1.0, %v1206_v63 }
 0x153   :  { %v279_v1 = vadd.f32 1.0, %v278_v0  ;;  %v1207_v2 = vpop.f32.mrb[10].mxu1  ;;  %779 = vperm.xlu1 %1326, %v274_v62  }
 0x154   :  { %v281_v9 = vpop.f32.mrb[11].mxu1  ;;  %v290_v16 = vadd.f32 1.0, %v1207_v2 }
 0x155   :  { %v282_v14 = vadd.f32 1.0, %v281_v9  ;;  %784 = vperm.xlu0 %1327, %v279_v1  }
 0x157   :  { %789 = vperm.xlu1 %1326, %v282_v14  }
 0x159   :  { %v1210_v17 = vpop.f32.mrb[12].mxu1  ;;  %794 = vperm.xlu0 %1327, %v287_v11   ;;  %v514_v11 = vadd.f32 %v1051_v46, %v1588_v39 }
 0x15a   :  { %v294_v18 = vpop.f32.mrb[13].mxu1  ;;  %v303_v25 = vadd.f32 1.0, %v1210_v17 }
 0x15b   :  { %v295_v19 = vadd.f32 1.0, %v294_v18  ;;  %v1211_v21 = vpop.f32.mrb[14].mxu1  ;;  %799 = vperm.xlu1 %1326, %v290_v16   ;;  %v519_v16 = vadd.f32 %v1582_v35, %v1051_v46  ;;  %v527_v35 = vadd.f32 %v1051_v46, %v1592_v43 }
 0x15c   :  { %v297_v24 = vpop.f32.mrb[15].mxu1  ;;  %v306_v36 = vadd.f32 1.0, %v1211_v21 }
 0x15d   :  { %v298_v34 = vadd.f32 1.0, %v297_v24  ;;  %804 = vperm.xlu0 %1327, %v295_v19  }
 0x15f   :  { %809 = vperm.xlu1 %1326, %v298_v34   ;;  %v530_v34 = vadd.f32 %v1051_v46, %v1596_v45 }
 0x161   :  { %814 = vperm.xlu0 %1327, %v303_v25  }
 0x163   :  { %819 = vperm.xlu1 %1326, %v306_v36  }
 0x181   :  { %v1598_v40 = vpop.permute.xlu1 %553 }
 0x182   :  { %v1623_v56 = vmul.f32 %v1598_v40, %v487_v51  ;;  %v538_v51 = vadd.f32 %v1594_v44, %v1051_v46 }
 0x185   :  { %v1600_v42 = vpop.permute.xlu1 %543 }
 0x186   :  { %v1614_v53 = vmul.f32 %v1600_v42, %v479_v48  ;;  %v535_v48 = vadd.f32 %v1590_v41, %v1051_v46 }
 0x189   :  { %v1605_v47 = vpop.permute.xlu1 %558 }
 0x18a   :  { %v1617_v54 = vmul.f32 %v1605_v47, %v490_v49 }
 0x18c   :  { %v638_v10 = vpack.c.bf16 %v1617_v54, %v1623_v56 }
 0x18d   :  { %v1611_v52 = vpop.permute.xlu1 %548 }
 0x18e   :  { %v1620_v55 = vmul.f32 %v1611_v52, %v482_v50 }
 0x190   :  { %v637_v12 = vpack.c.bf16 %v1620_v55, %v1614_v53 }
 0x191   :  { %v1627_v13 = vpop.permute.xlu1 %573 }
 0x192   :  { %1244 = vmatprep.subr.bf16.mxu1 %v637_v12  ;;  %v1651_v2 = vmul.f32 %v1627_v13, %v503_v60  ;;  %v1660_v9 = vpop.permute.xlu0 %583 }
 0x193   :  { %1245 = vmatpush3.bf16.msra.mxu1 %v637_v12  ;;  %v1667_v17 = vmul.f32 %v1660_v9, %v511_v30 }
 0x194   :  { %1246 = vmatprep.subr.bf16.mxu1 %v638_v10 }
 0x195   :  { %v1631_v15 = vpop.permute.xlu1 %563 }
 0x196   :  { %v1642_v63 = vmul.f32 %v1631_v15, %v495_v58 }
 0x197   :  { %1247 = vmatpush3.bf16.msra.mxu1 %v638_v10 }
 0x199   :  { %v1633_v57 = vpop.permute.xlu1 %578 }
 0x19a   :  { %v1645_v0 = vmul.f32 %v1633_v57, %v506_v59  ;;  %v1675_v21 = vpop.permute.xlu0 %603 }
 0x19b   :  { %v1693_v49 = vmul.f32 %v1675_v21, %v527_v35 }
 0x19c   :  { %v640_v23 = vpack.c.bf16 %v1645_v0, %v1651_v2 }
 0x19d   :  { %v1639_v62 = vpop.permute.xlu1 %568 }
 0x19e   :  { %v1648_v1 = vmul.f32 %v1639_v62, %v498_v61  ;;  %v1698_v43 = vpop.permute.xlu0 %613 }
 0x19f   :  { %v1706_v10 = vmul.f32 %v1698_v43, %v535_v48 }
 0x1a0   :  { %v639_v22 = vpack.c.bf16 %v1648_v1, %v1642_v63 }
 0x1a1   :  { %v1655_v20 = vpop.permute.xlu1 %593 }
 0x1a2   :  { %1248 = vmatprep.subr.bf16.mxu1 %v639_v22  ;;  %v1680_v24 = vmul.f32 %v1655_v20, %v519_v16 }
 0x1a3   :  { %1249 = vmatpush3.bf16.msra.mxu1 %v639_v22 }
 0x1a4   :  { %1250 = vmatprep.subr.bf16.mxu1 %v640_v23 }
 0x1a5   :  { %v1663_v14 = vpop.permute.xlu1 %588 }
 0x1a6   :  { %v1670_v18 = vmul.f32 %v1663_v14, %v514_v11 }
 0x1a7   :  { %1251 = vmatpush3.bf16.msra.mxu1 %v640_v23 }
 0x1a8   :  { %v641_v19 = vpack.c.bf16 %v1670_v18, %v1667_v17 }
 0x1a9   :  { %v1677_v39 = vpop.permute.xlu1 %598 }
 0x1aa   :  { %v1684_v25 = vmul.f32 %v1677_v39, %v522_v37  ;;  %1252 = vmatprep.subr.bf16.mxu1 %v641_v19 }
 0x1ab   :  { %1253 = vmatpush3.bf16.msra.mxu1 %v641_v19 }
 0x1ac   :  { %v642_v38 = vpack.c.bf16 %v1684_v25, %v1680_v24 }
 0x1ad   :  { %v1689_v36 = vpop.permute.xlu1 %608 }
 0x1ae   :  { %v1696_v50 = vmul.f32 %v1689_v36, %v530_v34  ;;  %1254 = vmatprep.subr.bf16.mxu1 %v642_v38 }
 0x1af   :  { %1255 = vmatpush3.bf16.msra.mxu1 %v642_v38 }
 0x1b0   :  { %v643_v45 = vpack.c.bf16 %v1696_v50, %v1693_v49 }
 0x1b1   :  { %v1703_v12 = vpop.permute.xlu1 %618 }
 0x1b2   :  { %v1709_v41 = vmul.f32 %v1703_v12, %v538_v51  ;;  %1256 = vmatprep.subr.bf16.mxu1 %v643_v45 }
 0x1b3   :  { %1257 = vmatpush3.bf16.msra.mxu1 %v643_v45 }
 0x1b4   :  { %v644_v58 = vpack.c.bf16 %v1709_v41, %v1706_v10 }
 0x1b6   :  { %1258 = vmatprep.subr.bf16.mxu1 %v644_v58 }
 0x1b7   :  { %1259 = vmatpush3.bf16.msra.mxu1 %v644_v58 }
 0x1ba   :  { %1261 = vmatmul.mubr.bf16.vlgmr.msra.gmra.mrb[16].mxu1 %v1545_v26 }
 0x1bb   :  { %1264 = vmatprep.mubr.bf16.mxu1 %v1548_v27 }
 0x1c2   :  { %1265 = vmatmul.mubr.bf16.gmra.mrb[20].mxu1 %v1551_v28 }
 0x1c3   :  { %1268 = vmatprep.mubr.bf16.mxu1 %v1554_v29 }
 0x1c4   :  { %v745_v46 = vpop.permute.xlu0 %744 }
 0x1c5   :  { %1384 = vrcp.f32 %v745_v46 }
 0x1c6   :  { %v750_v44 = vpop.permute.xlu1 %749 }
 0x1c7   :  { %1386 = vrcp.f32 %v750_v44 }
 0x1c8   :  { %v755_v60 = vpop.permute.xlu0 %754 }
 0x1ca   :  { %1269 = vmatmul.mubr.bf16.gmra.mrb[24].mxu1 %v1557_v31  ;;  %v760_v59 = vpop.permute.xlu1 %759 }
 0x1cb   :  { %1272 = vmatprep.mubr.bf16.mxu1 %v1560_v32  ;;  %1388 = vrcp.f32 %v760_v59 }
 0x1cc   :  { %v765_v26 = vpop.permute.xlu0 %764  ;;  %1390 = vrcp.f32 %v755_v60 }
 0x1cd   :  { %1392 = vrcp.f32 %v765_v26 }
 0x1ce   :  { %v770_v61 = vpop.permute.xlu1 %769 }
 0x1cf   :  { %1394 = vrcp.f32 %v770_v61  ;;  %v1385_v23 = vpop.eup %1384 }
 0x1d0   :  { %v775_v27 = vpop.permute.xlu0 %774 }
 0x1d1   :  { %v1387_v16 = vpop.eup %1386 }
 0x1d2   :  { %1273 = vmatmul.mubr.bf16.gmra.mrb[28].mxu1 %v1563_v33  ;;  %v780_v22 = vpop.permute.xlu1 %779 }
 0x1d3   :  { %1300 = vmatprep.mubr.bf16.mxu1 %v1469_v5  ;;  %1396 = vrcp.f32 %v780_v22 }
 0x1d4   :  { %v785_v29 = vpop.permute.xlu0 %784  ;;  %1398 = vrcp.f32 %v775_v27 }
 0x1d5   :  { %v1389_v34 = vpop.eup %1388  ;;  %1400 = vrcp.f32 %v785_v29 }
 0x1d6   :  { %v790_v28 = vpop.permute.xlu1 %789  ;;  %v1391_v45 = vpop.eup %1390 }
 0x1d7   :  { %1402 = vrcp.f32 %v790_v28  ;;  %v1393_v61 = vpop.eup %1392 }
 0x1d8   :  { %v795_v38 = vpop.permute.xlu0 %794 }
 0x1d9   :  { %v1395_v27 = vpop.eup %1394 }
 0x1da   :  { %v800_v37 = vpop.permute.xlu1 %799 }
 0x1db   :  { %1404 = vrcp.f32 %v800_v37 }
 0x1dc   :  { %v805_v29 = vpop.permute.xlu0 %804  ;;  %1406 = vrcp.f32 %v795_v38 }
 0x1dd   :  { %1408 = vrcp.f32 %v805_v29 }
 0x28d   :  { %v1262_v31 = vpop.f32.mrb[16].mxu1 }
 0x28e   :  { %v679_v32 = vpop.f32.mrb[17].mxu1  ;;  %v688_v19 = vadd.f32 %v1262_v31, %v1623_v56 }
 0x28f   :  { %v680_v5 = vadd.f32 %v679_v32, %v1614_v53  ;;  %v1263_v33 = vpop.f32.mrb[18].mxu1  ;;  %v1397_v32 = vpop.eup %1396 }
 0x290   :  { %v691_v30 = vadd.f32 %v1263_v33, %v1617_v54  ;;  %v682_v11 = vpop.f32.mrb[19].mxu1  ;;  %v1731_v58 = vmul.f32 %v1391_v45, %v688_v19 }
 0x291   :  { %v683_v35 = vadd.f32 %v682_v11, %v1620_v55  ;;  %v1725_v48 = vmul.f32 %v1385_v23, %v680_v5  ;;  %v810_v55 = vpop.permute.xlu1 %809 }
 0x292   :  { %v1727_v51 = vmul.f32 %v1389_v34, %v691_v30  ;;  %1410 = vrcp.f32 %v810_v55 }
 0x293   :  { %v1729_v53 = vmul.f32 %v1387_v16, %v683_v35  ;;  %v815_v16 = vpop.permute.xlu0 %814 }
 0x294   :  { %v855_v46 = vpack.c.bf16 %v1727_v51, %v1731_v58 }
 0x295   :  { %v854_v54 = vpack.c.bf16 %v1729_v53, %v1725_v48  ;;  %v1266_v44 = vpop.f32.mrb[20].mxu1  ;;  %v820_v23 = vpop.permute.xlu1 %819 }
 0x296   :  { %v695_v56 = vpop.f32.mrb[21].mxu1  ;;  %v704_v28 = vadd.f32 %v1266_v44, %v1651_v2  ;;  %1412 = vrcp.f32 %v820_v23 }
 0x297   :  { %v696_v59 = vadd.f32 %v695_v56, %v1642_v63  ;;  %v1267_v60 = vpop.f32.mrb[22].mxu1  ;;  %1276 = vmatprep.subr.bf16.mxu0 %v854_v54  ;;  %1308 = vmatprep.subr.bf16.mxu1 %v854_v54  ;;  %1414 = vrcp.f32 %v815_v16 }
 0x298   :  { %v707_v26 = vadd.f32 %v1267_v60, %v1645_v0  ;;  %v698_v22 = vpop.f32.mrb[23].mxu1  ;;  %1277 = vmatpush3.bf16.msra.mxu0 %v854_v54  ;;  %1316 = vmatpush3.bf16.msra.mxu1 %v854_v54  ;;  %v1399_v0 = vpop.eup %1398 }
 0x299   :  { %v699_v31 = vadd.f32 %v698_v22, %v1648_v1  ;;  %1278 = vmatprep.subr.bf16.mxu0 %v855_v46  ;;  %1309 = vmatprep.subr.bf16.mxu1 %v855_v46  ;;  %v1741_v63 = vmul.f32 %v1393_v61, %v696_v59  ;;  %v1747_v30 = vmul.f32 %v1399_v0, %v704_v28  ;;  %v1401_v34 = vpop.eup %1400 }
 0x29a   :  { %v1743_v5 = vmul.f32 %v1397_v32, %v707_v26  ;;  %v1403_v54 = vpop.eup %1402 }
 0x29b   :  { %v1745_v33 = vmul.f32 %v1395_v27, %v699_v31  ;;  %v1405_v55 = vpop.eup %1404 }
 0x29c   :  { %1279 = vmatpush3.bf16.msra.mxu0 %v855_v46  ;;  %1317 = vmatpush3.bf16.msra.mxu1 %v855_v46  ;;  %v857_v37 = vpack.c.bf16 %v1743_v5, %v1747_v30  ;;  %v1407_v60 = vpop.eup %1406 }
 0x29d   :  { %v856_v2 = vpack.c.bf16 %v1745_v33, %v1741_v63  ;;  %v1270_v1 = vpop.f32.mrb[24].mxu1  ;;  %v1409_v29 = vpop.eup %1408 }
 0x29e   :  { %v711_v11 = vpop.f32.mrb[25].mxu1  ;;  %v720_v44 = vadd.f32 %v1270_v1, %v1680_v24  ;;  %v1411_v32 = vpop.eup %1410 }
 0x29f   :  { %v712_v19 = vadd.f32 %v711_v11, %v1667_v17  ;;  %v1271_v35 = vpop.f32.mrb[26].mxu1  ;;  %1280 = vmatprep.subr.bf16.mxu0 %v856_v2  ;;  %1310 = vmatprep.subr.bf16.mxu1 %v856_v2 }
 0x2a0   :  { %v723_v38 = vadd.f32 %v1271_v35, %v1684_v25  ;;  %v714_v45 = vpop.f32.mrb[27].mxu1  ;;  %1281 = vmatpush3.bf16.msra.mxu0 %v856_v2  ;;  %1318 = vmatpush3.bf16.msra.mxu1 %v856_v2  ;;  %v843_v25 = vmul.f32 %v1407_v60, %v720_v44  ;;  %v1413_v2 = vpop.eup %1412 }
 0x2a1   :  { %v715_v56 = vadd.f32 %v714_v45, %v1670_v18  ;;  %1282 = vmatprep.subr.bf16.mxu0 %v857_v37  ;;  %1311 = vmatprep.subr.bf16.mxu1 %v857_v37  ;;  %v839_v17 = vmul.f32 %v1401_v34, %v712_v19  ;;  %v1415_v16 = vpop.eup %1414 }
 0x2a2   :  { %v845_v46 = vmul.f32 %v1405_v55, %v723_v38 }
 0x2a3   :  { %v1757_v59 = vmul.f32 %v1403_v54, %v715_v56 }
 0x2a4   :  { %1283 = vmatpush3.bf16.msra.mxu0 %v857_v37  ;;  %1319 = vmatpush3.bf16.msra.mxu1 %v857_v37  ;;  %v859_v27 = vpack.c.bf16 %v845_v46, %v843_v25 }
 0x2a5   :  { %v858_v61 = vpack.c.bf16 %v1757_v59, %v839_v17  ;;  %v1274_v26 = vpop.f32.mrb[28].mxu1 }
 0x2a6   :  { %v727_v22 = vpop.f32.mrb[29].mxu1  ;;  %v736_v0 = vadd.f32 %v1274_v26, %v1706_v10  ;;  %v1416_v10 = vld [vmem:[%s1861_s0 + $0x8] sm:$0xff]  }
 0x2a7   :  { %v728_v24 = vadd.f32 %v727_v22, %v1693_v49  ;;  %v1275_v18 = vpop.f32.mrb[30].mxu1  ;;  %1284 = vmatprep.subr.bf16.mxu0 %v858_v61  ;;  %1312 = vmatprep.subr.bf16.mxu1 %v858_v61 }
 0x2a8   :  { %v739_v28 = vadd.f32 %v1275_v18, %v1709_v41  ;;  %v730_v31 = vpop.f32.mrb[31].mxu1  ;;  %1285 = vmatpush3.bf16.msra.mxu0 %v858_v61  ;;  %1320 = vmatpush3.bf16.msra.mxu1 %v858_v61  ;;  %v1770_v41 = vmul.f32 %v1415_v16, %v736_v0 }
 0x2a9   :  { %v731_v23 = vadd.f32 %v730_v31, %v1696_v50  ;;  %1286 = vmatprep.subr.bf16.mxu0 %v859_v27  ;;  %1313 = vmatprep.subr.bf16.mxu1 %v859_v27  ;;  %v1764_v1 = vmul.f32 %v1409_v29, %v728_v24 }
 0x2aa   :  { %v1766_v49 = vmul.f32 %v1413_v2, %v739_v28 }
 0x2ab   :  { %v1768_v11 = vmul.f32 %v1411_v32, %v731_v23 }
 0x2ac   :  { %1287 = vmatpush3.bf16.msra.mxu0 %v859_v27  ;;  %1321 = vmatpush3.bf16.msra.mxu1 %v859_v27  ;;  %v861_v50 = vpack.c.bf16 %v1766_v49, %v1770_v41 }
 0x2ad   :  { %v860_v37 = vpack.c.bf16 %v1768_v11, %v1764_v1 }
 0x2af   :  { %1288 = vmatprep.subr.bf16.mxu0 %v860_v37  ;;  %1314 = vmatprep.subr.bf16.mxu1 %v860_v37 }
 0x2b0   :  { %1289 = vmatpush3.bf16.msra.mxu0 %v860_v37  ;;  %1322 = vmatpush3.bf16.msra.mxu1 %v860_v37 }
 0x2b1   :  { %1290 = vmatprep.subr.bf16.mxu0 %v861_v50  ;;  %1315 = vmatprep.subr.bf16.mxu1 %v861_v50 }
 0x2b4   :  { %1291 = vmatpush3.bf16.msra.mxu0 %v861_v50  ;;  %1323 = vmatpush3.bf16.msra.mxu1 %v861_v50 }
 0x2b7   :  { %1293 = vmatmul.mubr.bf16.vlgmr.msra.gmra.mrb[32].mxu0 %v1416_v10  ;;  %1301 = vmatmul.mubr.bf16.vlgmr.msra.gmra.mrb[32].mxu1 %v1475_v6 }
 0x2b8   :  { %1296 = vmatprep.mubr.bf16.mxu0 %v1457_v3  ;;  %1304 = vmatprep.mubr.bf16.mxu1 %v1481_v7 }
 0x2bf   :  { %1297 = vmatmul.mubr.bf16.gmra.mrb[36].mxu0 %v1463_v4  ;;  %1305 = vmatmul.mubr.bf16.gmra.mrb[36].mxu1 %v1487_v8 }
 0x38a   :  { %v1294_v19 = vpop.f32.mrb[32].mxu0  ;;  %v1302_v35 = vpop.f32.mrb[32].mxu1 }
 0x38b   :  { %v905_v34 = vadd.f32 %v1294_v19, %v1731_v58  ;;  %v937_v38 = vadd.f32 %v1302_v35, %v843_v25  ;;  %v896_v45 = vpop.f32.mrb[33].mxu0  ;;  %v928_v54 = vpop.f32.mrb[33].mxu1 }
 0x38c   :  { %v897_v44 = vadd.f32 %v896_v45, %v1725_v48  ;;  %v929_v56 = vadd.f32 %v928_v54, %v839_v17  ;;  %v1295_v55 = vpop.f32.mrb[34].mxu0  ;;  %v1303_v6 = vpop.f32.mrb[34].mxu1 }
 0x38d   :  { %v961_v3 = vmul.f32 %v905_v34, %v1598_v40  ;;  %v969_v7 = vmul.f32 %v937_v38, %v1655_v20  ;;  %v908_v4 = vadd.f32 %v1295_v55, %v1727_v51  ;;  %v940_v60 = vadd.f32 %v1303_v6, %v845_v46  ;;  %v899_v8 = vpop.f32.mrb[35].mxu0  ;;  %v931_v61 = vpop.f32.mrb[35].mxu1 }
 0x38e   :  { %v959_v26 = vmul.f32 %v897_v44, %v1600_v42  ;;  %v967_v58 = vmul.f32 %v929_v56, %v1660_v9  ;;  %v900_v25 = vadd.f32 %v899_v8, %v1729_v53  ;;  %v932_v48 = vadd.f32 %v931_v61, %v1757_v59 }
 0x38f   :  { %vm977_vm0 = vcmp.ge.f32.partialorder %v961_v3, 0.0  ;;  %v993_v17 = vmul.f32 0.2, %v961_v3  ;;  %vm985_vm1 = vcmp.ge.f32.partialorder %v969_v7, 0.0  ;;  %v1001_v22 = vmul.f32 0.2, %v969_v7 }
 0x390   :  { %vm975_vm2 = vcmp.ge.f32.partialorder %v959_v26, 0.0  ;;  %v991_v40 = vmul.f32 0.2, %v959_v26  ;;  %vm983_vm3 = vcmp.ge.f32.partialorder %v967_v58, 0.0  ;;  %v999_v20 = vmul.f32 0.2, %v967_v58 }
 0x391   :  { %v1009_v51 = vsel %vm977_vm0, %v961_v3, %v993_v17  ;;  %v1017_v46 = vsel %vm985_vm1, %v969_v7, %v1001_v22  ;;  %v962_v27 = vmul.f32 %v908_v4, %v1605_v47  ;;  %v970_v42 = vmul.f32 %v940_v60, %v1677_v39 }
 0x392   :  { %1025 = vst [vmem:[%s1865_s4 + $0x10] sm:$0xff] %v1009_v51  ;;  %1033 = vst [vmem:[%s1865_s4 + $0x50] sm:$0xff] %v1017_v46  ;;  %v1007_v9 = vsel %vm975_vm2, %v959_v26, %v991_v40  ;;  %v1015_v53 = vsel %vm983_vm3, %v967_v58, %v999_v20  ;;  %v960_v59 = vmul.f32 %v900_v25, %v1611_v52  ;;  %v1298_v18 = vpop.f32.mrb[36].mxu0  ;;  %v1306_v29 = vpop.f32.mrb[36].mxu1 }
 0x393   :  { %v968_v24 = vmul.f32 %v932_v48, %v1663_v14  ;;  %1023 = vst [vmem:[%s1865_s4] sm:$0xff] %v1007_v9  ;;  %1031 = vst [vmem:[%s1865_s4 + $0x40] sm:$0xff] %v1015_v53  ;;  %vm978_vm4 = vcmp.ge.f32.partialorder %v962_v27, 0.0  ;;  %v994_v47 = vmul.f32 0.2, %v962_v27  ;;  %vm986_vm5 = vcmp.ge.f32.partialorder %v970_v42, 0.0  ;;  %v912_v23 = vpop.f32.mrb[37].mxu0 }
 0x394   :  { %v1002_v39 = vmul.f32 0.2, %v970_v42  ;;  %vm976_vm6 = vcmp.ge.f32.partialorder %v960_v59, 0.0  ;;  %v992_v28 = vmul.f32 0.2, %v960_v59  ;;  %v921_v32 = vadd.f32 %v1298_v18, %v1747_v30  ;;  %v944_v2 = vpop.f32.mrb[37].mxu1 }
 0x395   :  { %vm984_vm7 = vcmp.ge.f32.partialorder %v968_v24, 0.0  ;;  %v1000_v52 = vmul.f32 0.2, %v968_v24  ;;  %v1010_v31 = vsel %vm978_vm4, %v962_v27, %v994_v47  ;;  %v953_v0 = vadd.f32 %v1306_v29, %v1770_v41  ;;  %v1299_v19 = vpop.f32.mrb[38].mxu0  ;;  %v1307_v30 = vpop.f32.mrb[38].mxu1 }
 0x396   :  { %v1018_v14 = vsel %vm986_vm5, %v970_v42, %v1002_v39  ;;  %1026 = vst [vmem:[%s1865_s4 + $0x18] sm:$0xff] %v1010_v31  ;;  %v1008_v16 = vsel %vm976_vm6, %v960_v59, %v992_v28  ;;  %v913_v50 = vadd.f32 %v912_v23, %v1741_v63  ;;  %v945_v10 = vadd.f32 %v944_v2, %v1764_v1  ;;  %v915_v38 = vpop.f32.mrb[39].mxu0  ;;  %v947_v1 = vpop.f32.mrb[39].mxu1 }
 0x397   :  { %1034 = vst [vmem:[%s1865_s4 + $0x58] sm:$0xff] %v1018_v14  ;;  %v1016_v37 = vsel %vm984_vm7, %v968_v24, %v1000_v52  ;;  %1024 = vst [vmem:[%s1865_s4 + $0x8] sm:$0xff] %v1008_v16  ;;  %v965_v41 = vmul.f32 %v921_v32, %v1627_v13  ;;  %v973_v35 = vmul.f32 %v953_v0, %v1698_v43 }
 0x398   :  { %1032 = vst [vmem:[%s1865_s4 + $0x48] sm:$0xff] %v1016_v37  ;;  %v924_v34 = vadd.f32 %v1299_v19, %v1743_v5  ;;  %v956_v63 = vadd.f32 %v1307_v30, %v1766_v49  ;;  %v963_v45 = vmul.f32 %v913_v50, %v1631_v15  ;;  %v971_v54 = vmul.f32 %v945_v10, %v1675_v21 }
 0x399   :  { %v916_v44 = vadd.f32 %v915_v38, %v1745_v33  ;;  %v948_v56 = vadd.f32 %v947_v1, %v1768_v11  ;;  %vm981_vm8 = vcmp.ge.f32.partialorder %v965_v41, 0.0  ;;  %v997_v55 = vmul.f32 0.2, %v965_v41 }
 0x39a   :  { %vm989_vm9 = vcmp.ge.f32.partialorder %v973_v35, 0.0  ;;  %v1005_v13 = vmul.f32 0.2, %v973_v35  ;;  %vm979_vm10 = vcmp.ge.f32.partialorder %v963_v45, 0.0  ;;  %v995_v43 = vmul.f32 0.2, %v963_v45 }
 0x39b   :  { %vm987_vm11 = vcmp.ge.f32.partialorder %v971_v54, 0.0  ;;  %v1003_v5 = vmul.f32 0.2, %v971_v54  ;;  %v1013_v6 = vsel %vm981_vm8, %v965_v41, %v997_v55  ;;  %v966_v3 = vmul.f32 %v924_v34, %v1633_v57 }
 0x39c   :  { %v1021_v49 = vsel %vm989_vm9, %v973_v35, %v1005_v13  ;;  %v974_v15 = vmul.f32 %v956_v63, %v1703_v12  ;;  %1029 = vst [vmem:[%s1865_s4 + $0x30] sm:$0xff] %v1013_v6  ;;  %v1011_v21 = vsel %vm979_vm10, %v963_v45, %v995_v43  ;;  %v964_v11 = vmul.f32 %v916_v44, %v1639_v62 }
 0x39d   :  { %1037 = vst [vmem:[%s1865_s4 + $0x70] sm:$0xff] %v1021_v49  ;;  %v1019_v33 = vsel %vm987_vm11, %v971_v54, %v1003_v5  ;;  %v972_v7 = vmul.f32 %v948_v56, %v1689_v36  ;;  %1027 = vst [vmem:[%s1865_s4 + $0x20] sm:$0xff] %v1011_v21  ;;  %vm982_vm12 = vcmp.ge.f32.partialorder %v966_v3, 0.0  ;;  %v998_v57 = vmul.f32 0.2, %v966_v3 }
 0x39e   :  { %1035 = vst [vmem:[%s1865_s4 + $0x60] sm:$0xff] %v1019_v33  ;;  %vm990_vm13 = vcmp.ge.f32.partialorder %v974_v15, 0.0  ;;  %v1006_v12 = vmul.f32 0.2, %v974_v15  ;;  %vm980_vm14 = vcmp.ge.f32.partialorder %v964_v11, 0.0 }
 0x39f   :  { %v996_v4 = vmul.f32 0.2, %v964_v11  ;;  %vm988_vm15 = vcmp.ge.f32.partialorder %v972_v7, 0.0  ;;  %v1004_v60 = vmul.f32 0.2, %v972_v7  ;;  %v1014_v8 = vsel %vm982_vm12, %v966_v3, %v998_v57 }
 0x3a0   :  { %v1022_v62 = vsel %vm990_vm13, %v974_v15, %v1006_v12  ;;  %1030 = vst [vmem:[%s1865_s4 + $0x38] sm:$0xff] %v1014_v8 }
 0x3a1   :  { %1038 = vst [vmem:[%s1865_s4 + $0x78] sm:$0xff] %v1022_v62  ;;  %v1012_v36 = vsel %vm980_vm14, %v964_v11, %v996_v4  ;;  %v1020_v61 = vsel %vm988_vm15, %v972_v7, %v1004_v60 }
 0x3a2   :  { %1028 = vst [vmem:[%s1865_s4 + $0x28] sm:$0xff] %v1012_v36  ;;  %1036 = vst [vmem:[%s1865_s4 + $0x68] sm:$0xff] %v1020_v61 }

</bundles_post_ra>
